<compile_context>
chip_gen: v5e
topology: v5e:2x2
jax: 0.10.0
libtpu: 0.0.40
codegen_flags: <defaults>
</compile_context>

<pallas_src>
from functools import partial

import numpy as np
import jax
import jax.numpy as jnp
from jax.experimental import pallas as pl
from jax.experimental.pallas import tpu as pltpu


# ---------------------------------------------------------------------------
# 3x3 kernel-rotation maps: new[i][j] = orig[ROT_MAPS[n][i][j]]
# (exact transcription of AdaptiveAngleConv._rotate_kernel for n = angle // 45)
# ---------------------------------------------------------------------------
ROT_MAPS = [
    [[(0, 0), (0, 1), (0, 2)], [(1, 0), (1, 1), (1, 2)], [(2, 0), (2, 1), (2, 2)]],  # 0
    [[(1, 0), (0, 0), (0, 1)], [(2, 0), (1, 1), (0, 2)], [(2, 1), (2, 2), (1, 2)]],  # 45
    [[(2, 0), (1, 0), (0, 0)], [(2, 1), (1, 1), (0, 1)], [(2, 2), (1, 2), (0, 2)]],  # 90
    [[(2, 1), (2, 0), (1, 0)], [(2, 2), (1, 1), (0, 0)], [(1, 2), (0, 2), (0, 1)]],  # 135
    [[(2, 2), (2, 1), (2, 0)], [(1, 2), (1, 1), (1, 0)], [(0, 2), (0, 1), (0, 0)]],  # 180
    [[(1, 2), (2, 2), (2, 1)], [(0, 2), (1, 1), (2, 0)], [(0, 1), (0, 0), (1, 0)]],  # 225
    [[(0, 2), (1, 2), (2, 2)], [(0, 1), (1, 1), (2, 1)], [(0, 0), (1, 0), (2, 0)]],  # 270
    [[(0, 1), (0, 2), (1, 2)], [(0, 0), (1, 1), (2, 2)], [(1, 0), (2, 0), (2, 1)]],  # 315
]

# Per-tile VMEM budget for the largest single input block (bf16). With double
# buffering + f32 output tile + weights the total working set stays well under
# v7x's 64 MiB per-TC VMEM (sized for <= ~48 MiB total, per review).
_TILE_BUDGET_BYTES = 512 * 1024
_TILE_ROW_BYTES_FACTOR = 18  # max(9*2 bf16 im2col, 8*2 bf16 branches) B / (pixel, ch)
_VMEM_LIMIT = 48 * 1024 * 1024


def _round_up(x, m):
    return (x + m - 1) // m * m


def _pick_tile_rows(H, W, C):
    """Largest divisor th of H with (th*W) % 8 == 0 (or th == H) that keeps the
    per-buffer tile under _TILE_BUDGET_BYTES."""
    per_row = W * C * _TILE_ROW_BYTES_FACTOR
    candidates = [th for th in range(1, H + 1)
                  if H % th == 0 and (th == H or (th * W) % 8 == 0)]
    fitting = [th for th in candidates if th * per_row <= _TILE_BUDGET_BYTES]
    return max(fitting) if fitting else min(candidates)


# ---------------------------------------------------------------------------
# Pallas kernels
# ---------------------------------------------------------------------------
def _conv1x1_kernel(x_ref, w_ref, b_ref, o_ref, acc_ref):
    # x: (tm, tk), w: (tk, Co), b: (1, Co), o: (tm, Co); K-reduction on axis 1.
    k = pl.program_id(1)

    @pl.when(k == 0)
    def _():
        acc_ref[...] = jnp.zeros_like(acc_ref)

    acc_ref[...] += jnp.dot(x_ref[...], w_ref[...],
                            preferred_element_type=jnp.float32)

    @pl.when(k == pl.num_programs(1) - 1)
    def _():
        o_ref[...] = acc_ref[...] + b_ref[...]


def _aac_kernel(x_ref, w_ref, b_ref, o_ref):
    # x_ref: (1, TM, 9*C) bf16 im2col tile (block index ignores the branch axis
    #        -> stays resident in VMEM across the 8 branch grid steps)
    # w_ref: (1, 9*C, Co) bf16 rotated-branch weight (3x3 taps folded into K)
    # b_ref: (1, Co) f32
    # o_ref: (1, 1, TM, Co) bf16
    acc = jnp.dot(x_ref[0], w_ref[0], preferred_element_type=jnp.float32)
    o_ref[0, 0] = (acc + b_ref[...]).astype(o_ref.dtype)


def _sk_att_kernel(br_ref, bns_ref, bnb_ref, w1_ref, b1_ref, w2_ref, b2_ref,
                   att_ref, gap_ref, *, inv_m):
    # Phase 1 of SKConv: tiled GAP of fea_U = sum_b ReLU(BN(branch_b)), then the
    # FC1 -> FC2 -> softmax attention once, at the last spatial tile.
    # br_ref: (8, 1, TM, C) bf16; bns/bnb: (7, C); w1: (C, d); b1: (1, d);
    # w2: (7, d, C); b2: (7, C); att_ref: (1, 7, C) f32; gap_ref: (1, C) f32 scratch.
    C = br_ref.shape[3]
    mt = pl.program_id(1)

    @pl.when(mt == 0)
    def _():
        gap_ref[...] = jnp.zeros_like(gap_ref)

    acc = jnp.zeros((1, C), jnp.float32)
    for b in range(7):
        x = br_ref[b + 1, 0].astype(jnp.float32)
        y = jnp.maximum(x * bns_ref[b] + bnb_ref[b], 0.0)
        acc = acc + jnp.sum(y, axis=0, keepdims=True)
    gap_ref[...] += acc

    @pl.when(mt == pl.num_programs(1) - 1)
    def _():
        fea_s = gap_ref[...] * inv_m                                   # (1, C)
        fea_z = jnp.dot(fea_s, w1_ref[...],
                        preferred_element_type=jnp.float32) + b1_ref[...]  # (1, d)
        d = fea_z.shape[1]
        # Single batched MXU op for all 7 attention FCs (no per-dot drains,
        # no sublane concatenate).
        z7 = jnp.broadcast_to(fea_z, (7, d))
        logits = jnp.einsum("bd,bdc->bc", z7, w2_ref[...],
                            preferred_element_type=jnp.float32) + b2_ref[...]
        att_ref[0] = jax.nn.softmax(logits, axis=0)                    # (7, C)


def _sk_apply_kernel(br_ref, att_ref, bns_ref, bnb_ref, o_ref):
    # Phase 2 of SKConv: weighted branch sum + residual with branch 0, per tile.
    # br_ref: (8, 1, TM, C) bf16; att_ref: (1, 7, C) f32; o_ref: (1, TM, C) f32.
    att = att_ref[0]                                  # (7, C)
    fea_v = br_ref[0, 0].astype(jnp.float32)          # residual (no BN/ReLU)
    for b in range(7):
        x = br_ref[b + 1, 0].astype(jnp.float32)
        y = jnp.maximum(x * bns_ref[b] + bnb_ref[b], 0.0)
        fea_v = fea_v + y * att[b]
    o_ref[0] = fea_v


# ---------------------------------------------------------------------------
# Wrappers
# ---------------------------------------------------------------------------
def conv1x1(x_nhwc, w, b, *, tm=256, tk=512):
    """FPN lateral conv (ConvModule 1x1 conv, no norm, no act), M/K tiled."""
    N, H, W, Ci = x_nhwc.shape
    Co = w.shape[1]
    M = N * H * W
    x2d = x_nhwc.reshape(M, Ci)

    tm_eff = min(tm, _round_up(M, 8))
    Mp = _round_up(M, tm_eff)
    tk_eff = min(tk, Ci)
    Kp = _round_up(Ci, tk_eff)

    pad_m, pad_k = Mp - M, Kp - Ci
    if pad_m or pad_k:
        x2d = jnp.pad(x2d, ((0, pad_m), (0, pad_k)))
    wp = jnp.pad(w, ((0, pad_k), (0, 0))) if pad_k else w

    out = pl.pallas_call(
        _conv1x1_kernel,
        out_shape=jax.ShapeDtypeStruct((Mp, Co), jnp.float32),
        grid_spec=pltpu.PrefetchScalarGridSpec(
            num_scalar_prefetch=0,
            grid=(Mp // tm_eff, Kp // tk_eff),
            in_specs=[pl.BlockSpec((tm_eff, tk_eff), lambda i, k: (i, k)),
                      pl.BlockSpec((tk_eff, Co), lambda i, k: (k, 0)),
                      pl.BlockSpec((1, Co), lambda i, k: (0, 0))],
            out_specs=pl.BlockSpec((tm_eff, Co), lambda i, k: (i, 0)),
            scratch_shapes=[pltpu.VMEM((tm_eff, Co), jnp.float32)]),
        compiler_params=pltpu.CompilerParams(
            dimension_semantics=("parallel", "arbitrary"),
            vmem_limit_bytes=_VMEM_LIMIT),
    )(x2d, wp, b.reshape(1, Co))
    return out[:M].reshape(N, H, W, Co)


def adaptive_angle_conv(x_nhwc, w_rot, b, tile_rows):
    """8-branch 3x3 conv (stride 1, pad 1) with rotated kernels.
    x: (N,H,W,C), w_rot: (8,3,3,C,Co) HWIO, b: (Co,). Returns (8, N, H*W, Co) bf16."""
    N, H, W, C = x_nhwc.shape
    Co = w_rot.shape[-1]
    M = H * W
    TM = tile_rows * W
    n_mt = H // tile_rows

    # im2col glue in XLA, emitted in bf16 to halve HBM traffic; inside the
    # kernel each branch is a single K = 9*C matmul against this tile.
    # TODO(synk): eliminate the HBM im2col entirely by halo-DMA'ing row tiles of
    # the padded image with pl.ANY + pltpu.make_async_copy.
    xp = jnp.pad(x_nhwc, ((0, 0), (1, 1), (1, 1), (0, 0)))
    taps = [xp[:, dy:dy + H, dx:dx + W, :] for dy in range(3) for dx in range(3)]
    x_taps = jnp.concatenate(taps, axis=-1).reshape(N, M, 9 * C)
    x_taps = x_taps.astype(jnp.bfloat16)
    w_flat = w_rot.reshape(8, 9 * C, Co).astype(jnp.bfloat16)

    return pl.pallas_call(
        _aac_kernel,
        out_shape=jax.ShapeDtypeStruct((8, N, M, Co), jnp.bfloat16),
        grid_spec=pltpu.PrefetchScalarGridSpec(
            num_scalar_prefetch=0,
            grid=(N, n_mt, 8),   # branch innermost -> activation tile resident
            in_specs=[
                pl.BlockSpec((1, TM, 9 * C), lambda n, mt, br: (n, mt, 0)),
                pl.BlockSpec((1, 9 * C, Co), lambda n, mt, br: (br, 0, 0)),
                pl.BlockSpec((1, Co), lambda n, mt, br: (0, 0)),
            ],
            out_specs=pl.BlockSpec((1, 1, TM, Co),
                                   lambda n, mt, br: (br, n, mt, 0))),
        compiler_params=pltpu.CompilerParams(
            dimension_semantics=("parallel", "parallel", "arbitrary"),
            vmem_limit_bytes=_VMEM_LIMIT),
    )(x_taps, w_flat, b.reshape(1, Co).astype(jnp.float32))


def sk_fuse(branches, bn_scale, bn_shift, w1, b1, w2, b2, H, W, tile_rows):
    """SKConv(features=C, M=8, r=2, L=32) fusion, two tiled passes.
    branches: (8, N, H*W, C) bf16."""
    _, N, M, C = branches.shape
    d = w1.shape[1]
    TM = tile_rows * W
    n_mt = M // TM

    # Phase 1: tiled GAP accumulation + attention (computed at the last tile).
    att = pl.pallas_call(
        partial(_sk_att_kernel, inv_m=1.0 / M),
        out_shape=jax.ShapeDtypeStruct((N, 7, C), jnp.float32),
        grid_spec=pltpu.PrefetchScalarGridSpec(
            num_scalar_prefetch=0,
            grid=(N, n_mt),
            in_specs=[pl.BlockSpec((8, 1, TM, C), lambda n, mt: (0, n, mt, 0)),
                      pl.BlockSpec((7, C), lambda n, mt: (0, 0)),
                      pl.BlockSpec((7, C), lambda n, mt: (0, 0)),
                      pl.BlockSpec((C, d), lambda n, mt: (0, 0)),
                      pl.BlockSpec((1, d), lambda n, mt: (0, 0)),
                      pl.BlockSpec((7, d, C), lambda n, mt: (0, 0, 0)),
                      pl.BlockSpec((7, C), lambda n, mt: (0, 0))],
            out_specs=pl.BlockSpec((1, 7, C), lambda n, mt: (n, 0, 0)),
            scratch_shapes=[pltpu.VMEM((1, C), jnp.float32)]),
        compiler_params=pltpu.CompilerParams(
            dimension_semantics=("parallel", "arbitrary"),
            vmem_limit_bytes=_VMEM_LIMIT),
    )(branches, bn_scale, bn_shift, w1, b1.reshape(1, d), w2, b2)

    # Phase 2: apply attention per tile (fully parallel).
    fused = pl.pallas_call(
        _sk_apply_kernel,
        out_shape=jax.ShapeDtypeStruct((N, M, C), jnp.float32),
        grid_spec=pltpu.PrefetchScalarGridSpec(
            num_scalar_prefetch=0,
            grid=(N, n_mt),
            in_specs=[pl.BlockSpec((8, 1, TM, C), lambda n, mt: (0, n, mt, 0)),
                      pl.BlockSpec((1, 7, C), lambda n, mt: (n, 0, 0)),
                      pl.BlockSpec((7, C), lambda n, mt: (0, 0)),
                      pl.BlockSpec((7, C), lambda n, mt: (0, 0))],
            out_specs=pl.BlockSpec((1, TM, C), lambda n, mt: (n, mt, 0))),
        compiler_params=pltpu.CompilerParams(
            dimension_semantics=("parallel", "parallel"),
            vmem_limit_bytes=_VMEM_LIMIT),
    )(branches, att, bn_scale, bn_shift)
    return fused.reshape(N, H, W, C)


# ---------------------------------------------------------------------------
# FPN_AAR1 forward
# ---------------------------------------------------------------------------
def fpn_aar1_forward(inputs, params, num_outs):
    # 1) laterals (tiled Pallas 1x1-conv kernel)
    laterals = [conv1x1(x, params["lat_w"][i], params["lat_b"][i])
                for i, x in enumerate(inputs)]

    # 2) top-down path: F.interpolate(nearest, size=prev) + add.
    #    Pyramid levels here are exact 2x, so nearest == pixel repeat.
    # TODO(synk): the upsample+add could be folded into the AAC im2col to save
    # one full-resolution HBM round trip per level; kept as XLA glue.
    for i in range(len(laterals) - 1, 0, -1):
        up = jnp.repeat(jnp.repeat(laterals[i], 2, axis=1), 2, axis=2)
        laterals[i - 1] = laterals[i - 1] + up

    # 3) AdaptiveAngleConv (8 rotated 3x3 convs) + SKConv fusion (Pallas)
    outs = []
    for i, lat in enumerate(laterals):
        N, H, W, C = lat.shape
        th = _pick_tile_rows(H, W, C)
        branches = adaptive_angle_conv(lat, params["rot_w"][i],
                                       params["rot_b"][i], th)
        fused = sk_fuse(branches,
                        params["bn_scale"][i], params["bn_shift"][i],
                        params["fc1_w"][i], params["fc1_b"][i],
                        params["fc2_w"][i], params["fc2_b"][i], H, W, th)
        outs.append(fused)

    # 4) extra levels (add_extra_convs=False): F.max_pool2d(x, 1, stride=2)
    #    == stride-2 subsample.  (glue)
    while len(outs) < num_outs:
        outs.append(outs[-1][:, ::2, ::2, :])
    return tuple(outs)


# ---------------------------------------------------------------------------
# Deterministic parameter init (synthetic; shapes follow the module __init__)
# ---------------------------------------------------------------------------
def init_params(key, in_channels, out_channels):
    # SKConv(features, M=8, r=2, L=32). The PyTorch module hardcodes features=256
    # (== out_channels in its config); here features = out_channels for small shapes.
    d = max(out_channels // 2, 32)
    names = ["lat_w", "lat_b", "rot_w", "rot_b", "bn_scale", "bn_shift",
             "fc1_w", "fc1_b", "fc2_w", "fc2_b"]
    params = {k: [] for k in names}
    maps = np.array(ROT_MAPS)  # (8, 3, 3, 2)

    for ci in in_channels:
        key, *ks = jax.random.split(key, 13)
        lat_w = 0.1 * jax.random.normal(ks[0], (ci, out_channels), jnp.float32)
        lat_b = 0.1 * jax.random.normal(ks[1], (out_channels,), jnp.float32)

        base_w = 0.05 * jax.random.normal(
            ks[2], (3, 3, out_channels, out_channels), jnp.float32)  # HWIO
        rot_w = jnp.stack(
            [base_w[maps[n, :, :, 0], maps[n, :, :, 1]] for n in range(8)], axis=0)
        rot_b = 0.1 * jax.random.normal(ks[3], (out_channels,), jnp.float32)

        # TODO(synk): BatchNorm2d is modeled in inference mode (folded scale/shift);
        # training-mode batch statistics are not reproduced.
        gamma = 1.0 + 0.1 * jax.random.normal(ks[4], (7, out_channels), jnp.float32)
        beta = 0.1 * jax.random.normal(ks[5], (7, out_channels), jnp.float32)
        rmean = 0.1 * jax.random.normal(ks[6], (7, out_channels), jnp.float32)
        rvar = 1.0 + 0.1 * jnp.abs(
            jax.random.normal(ks[7], (7, out_channels), jnp.float32))
        bn_scale = gamma / jnp.sqrt(rvar + 1e-5)
        bn_shift = beta - rmean * bn_scale

        fc1_w = 0.1 * jax.random.normal(ks[8], (out_channels, d), jnp.float32)
        fc1_b = 0.1 * jax.random.normal(ks[9], (d,), jnp.float32)
        fc2_w = 0.1 * jax.random.normal(ks[10], (7, d, out_channels), jnp.float32)
        fc2_b = 0.1 * jax.random.normal(ks[11], (7, out_channels), jnp.float32)

        for name, val in zip(names, [lat_w, lat_b, rot_w, rot_b, bn_scale,
                                     bn_shift, fc1_w, fc1_b, fc2_w, fc2_b]):
            params[name].append(val)
    return params


if __name__ == "__main__":
    IN_CHANNELS = [8, 16, 32]   # backbone channels per level
    OUT_CHANNELS = 32
    NUM_OUTS = 5
    SIZES = [16, 8, 4]          # spatial sizes (exact 2x pyramid)
    BATCH = 2

    key = jax.random.PRNGKey(0)
    key, kx = jax.random.split(key)
    xkeys = jax.random.split(kx, len(IN_CHANNELS))
    inputs = [jax.random.normal(
        xkeys[i], (BATCH, SIZES[i], SIZES[i], IN_CHANNELS[i]), jnp.float32)
        for i in range(len(IN_CHANNELS))]

    params = init_params(key, IN_CHANNELS, OUT_CHANNELS)
    outs = fpn_aar1_forward(inputs, params, NUM_OUTS)
    outs = jax.block_until_ready(outs)

    assert len(outs) == NUM_OUTS
    expected_sizes = [16, 8, 4, 2, 1]
    for o, s in zip(outs, expected_sizes):
        assert o.shape == (BATCH, s, s, OUT_CHANNELS), o.shape
        assert bool(jnp.all(jnp.isfinite(o)))
    print("KERNEL_OK")
</pallas_src>

<mosaic_0001>
module attributes {stable_mosaic.version = 11 : i64} {
  func.func @_conv1x1_kernel(%arg0: i32, %arg1: i32, %arg2: memref<256x8xf32, #tpu.memory_space<vmem>>, %arg3: memref<8x32xf32, #tpu.memory_space<vmem>>, %arg4: memref<1x32xf32, #tpu.memory_space<vmem>>, %arg5: memref<256x32xf32, #tpu.memory_space<vmem>>, %arg6: memref<256x32xf32, #tpu.memory_space<vmem>>) attributes {dimension_semantics = [#tpu.dimension_semantics<parallel>, #tpu.dimension_semantics<arbitrary>], iteration_bounds = array<i64: 2, 1>, scalar_prefetch = 0 : i64, scratch_operands = 1 : i64, tpu.core_type = #tpu.core_type<tc>, window_params = [{transform_indices = @transform_0, window_bounds = array<i64: 256, 8>}, {transform_indices = @transform_1, window_bounds = array<i64: 8, 32>}, {pipeline_mode = #tpu.pipeline_mode<synchronous>, transform_indices = @transform_2, window_bounds = array<i64: 1, 32>}, {transform_indices = @transform_3, window_bounds = array<i64: 256, 32>}]} {
    %c0_i32 = arith.constant 0 : i32
    %0 = arith.cmpi eq, %arg1, %c0_i32 : i32
    %1 = arith.extui %0 : i1 to i32
    %c0_i32_0 = arith.constant 0 : i32
    %2 = arith.cmpi ne, %1, %c0_i32_0 : i32
    scf.if %2 {
      %cst_10 = arith.constant 0.000000e+00 : f32
      %12 = vector.broadcast %cst_10 : f32 to vector<256x32xf32>
      %c0_11 = arith.constant 0 : index
      %c0_12 = arith.constant 0 : index
      %13 = vector.load %arg6[%c0_11, %c0_12] : memref<256x32xf32, #tpu.memory_space<vmem>>, vector<256x32xf32>
      tpu.vector_store %arg6[%c0_11, %c0_12], %12 {strides = array<i32>} : memref<256x32xf32, #tpu.memory_space<vmem>>, vector<256x32xf32>,
    } else {
    }
    %c0 = arith.constant 0 : index
    %c0_1 = arith.constant 0 : index
    %3 = vector.load %arg6[%c0, %c0_1] : memref<256x32xf32, #tpu.memory_space<vmem>>, vector<256x32xf32>
    %c0_2 = arith.constant 0 : index
    %c0_3 = arith.constant 0 : index
    %4 = vector.load %arg2[%c0_2, %c0_3] : memref<256x8xf32, #tpu.memory_space<vmem>>, vector<256x8xf32>
    %c0_4 = arith.constant 0 : index
    %c0_5 = arith.constant 0 : index
    %5 = vector.load %arg3[%c0_4, %c0_5] : memref<8x32xf32, #tpu.memory_space<vmem>>, vector<8x32xf32>
    %cst = arith.constant dense<0.000000e+00> : vector<256x32xf32>
    %6 = tpu.matmul %4, %5, %cst {dimension_numbers = #tpu.dot_dimension_numbers<[1], [0], [0], [1], [0, 0, 1, 1], [], []>} : vector<256x8xf32>, vector<8x32xf32>, vector<256x32xf32> -> vector<256x32xf32>
    %7 = arith.addf %3, %6 : vector<256x32xf32>
    %c0_6 = arith.constant 0 : index
    %c0_7 = arith.constant 0 : index
    %8 = vector.load %arg6[%c0_6, %c0_7] : memref<256x32xf32, #tpu.memory_space<vmem>>, vector<256x32xf32>
    tpu.vector_store %arg6[%c0_6, %c0_7], %7 {strides = array<i32>} : memref<256x32xf32, #tpu.memory_space<vmem>>, vector<256x32xf32>,
    %c0_i32_8 = arith.constant 0 : i32
    %9 = arith.cmpi eq, %arg1, %c0_i32_8 : i32
    %10 = arith.extui %9 : i1 to i32
    %c0_i32_9 = arith.constant 0 : i32
    %11 = arith.cmpi ne, %10, %c0_i32_9 : i32
    scf.if %11 {
      %c0_10 = arith.constant 0 : index
      %c0_11 = arith.constant 0 : index
      %12 = vector.load %arg6[%c0_10, %c0_11] : memref<256x32xf32, #tpu.memory_space<vmem>>, vector<256x32xf32>
      %c0_12 = arith.constant 0 : index
      %c0_13 = arith.constant 0 : index
      %13 = vector.load %arg4[%c0_12, %c0_13] : memref<1x32xf32, #tpu.memory_space<vmem>>, vector<1x32xf32>
      %14 = vector.broadcast %13 : vector<1x32xf32> to vector<256x32xf32>
      %15 = arith.addf %12, %14 : vector<256x32xf32>
      %c0_14 = arith.constant 0 : index
      %c0_15 = arith.constant 0 : index
      %16 = vector.load %arg5[%c0_14, %c0_15] : memref<256x32xf32, #tpu.memory_space<vmem>>, vector<256x32xf32>
      tpu.vector_store %arg5[%c0_14, %c0_15], %15 {strides = array<i32>} : memref<256x32xf32, #tpu.memory_space<vmem>>, vector<256x32xf32>,
    } else {
    }
    return
  }
  func.func @transform_0(%arg0: i32, %arg1: i32) -> (i32, i32) {
    %c0_i32 = arith.constant 0 : i32
    return %arg0, %arg1 : i32, i32
  }
  func.func @transform_1(%arg0: i32, %arg1: i32) -> (i32, i32) {
    %c0_i32 = arith.constant 0 : i32
    %c0_i32_0 = arith.constant 0 : i32
    return %arg1, %c0_i32 : i32, i32
  }
  func.func @transform_2(%arg0: i32, %arg1: i32) -> (i32, i32) {
    %c0_i32 = arith.constant 0 : i32
    %c0_i32_0 = arith.constant 0 : i32
    %c0_i32_1 = arith.constant 0 : i32
    return %c0_i32, %c0_i32_0 : i32, i32
  }
  func.func @transform_3(%arg0: i32, %arg1: i32) -> (i32, i32) {
    %c0_i32 = arith.constant 0 : i32
    %c0_i32_0 = arith.constant 0 : i32
    return %arg0, %c0_i32 : i32, i32
  }
}

</mosaic_0001>

<bundles_post_ra>
// kernel: tpu_custom_call.1
= control target key start
LH: loop header
LB: loop body
LE: loop exit
PB: predicated region body
PF: predicated region fallthrough
CT: control target
= control target key end

     0   :  { %s895_s12 = smov 0   ;;  %s897_s13 = smov 0   ;;  %s1203_s0 = inlined_call_operand.vmem [shape: f32[512,8], index: 0, kind: input, shape index: {}]   ;;  %s1204_s1 = inlined_call_operand.vmem [shape: f32[8,32], index: 1, kind: input, shape index: {}]   ;;  %s1205_s2 = inlined_call_operand.vmem [shape: f32[1,32], index: 2, kind: input, shape index: {}]   ;;  %s1206_s3 = inlined_call_operand.vmem [shape: f32[512,32], index: 3, kind: output, shape index: {}]  }
   0x1   :  { %s899_s14 = smov 0  }
   0x2 LB: > { %s25_s15 = sadd.s32 1, %s868_s13  ;;  %p782_p0 = scmp.ge.s32.totalorder %s872_s14, 1  ;;  %s872_s14 = sphi %s899_s14, %s13_s14   ;;  %s868_s13 = sphi %s897_s13, %s1208_s13   ;;  %s864_s12 = sphi %s895_s12, %s1207_s12  }
   0x3   : > { %p27_p1 = scmp.ge.s32.totalorder %s25_s15, 2  ;;  %p164_p2 = scmp.lt.s32.totalorder %s872_s14, 3 }
   0x5   : > { %s1210_s15 = smov (%p27_p1, %s25_s15), 0  ;;  %p165_p3 = pnand %p782_p0, %p164_p2 }
   0x6   : > { %s783_s18 = sshll.u32 (!%p165_p3), %s864_s12, 5 }
   0x7   : > { %168 = sbr.rel (%p165_p3) target bundleno = 218 (0xda), region = 32  ;;  %p196_p4 = scmp.lt.s32.totalorder (!%p165_p3), %s783_s18, 63 }
   0xc   : > { %v315_v0 = vld [vmem:[%s1204_s1] sm:$0xff]  ;;  %s1212_s18 = smov (!%p196_p4, %s783_s18), 63  ;;  %vm316_vm0 = vcmask 64512   ;;  %vm218_vm1 = vcmask 261120   ;;  %v874_v17 = vmov 0.0  }
   0xd   : > { %822 = vmatpush.msra.mxu2 %v315_v0  ;;  %823 = vmatpush.msra.mxu3 %v315_v0  ;;  %s784_s19 = sshll.u32 %s1212_s18, 3  ;;  %219 = vst.msk [vmem:[#allocation2] sm:$0xff] %vm218_vm1, %v874_v17  ;;  %v1059_v48 = vld [vmem:[%s1205_s2] ss:$0 sm:$0xff] }
   0xe   : > { %428 = vmatpush.msra.mxu0 %v315_v0  ;;  %821 = vmatpush.msra.mxu1 %v315_v0  ;;  %s924_s22 = scalar_lea.vmem %s1203_s0, %s784_s19  ;;  %220 = vst.msk [vmem:[#allocation2 + $0x8] sm:$0xff] %vm218_vm1, %v874_v17  ;;  %s1068_s27 = scalar_lea.vmem %s1206_s3, %s784_s19 }
   0xf   : > { %v299_v1 = vld [vmem:[%s924_s22 + $0x80] sm:$0xff]  ;;  %v300_v5 = vld [vmem:[%s924_s22 + $0x88] sm:$0xff]  ;;  %v301_v9 = vld [vmem:[%s924_s22 + $0x90] sm:$0xff]  ;;  %221 = vst.msk [vmem:[#allocation2 + $0x10] sm:$0xff] %vm218_vm1, %v874_v17 }
  0x10   : > { %v307_v2 = vld [vmem:[%s924_s22 + $0xc0] sm:$0xff]  ;;  %803 = vmatmul.msk.f32.vlgmr.msra.gmra.mxu2 %vm316_vm0, %v299_v1  ;;  %v308_v6 = vld [vmem:[%s924_s22 + $0xc8] sm:$0xff]  ;;  %v309_v10 = vld [vmem:[%s924_s22 + $0xd0] sm:$0xff]  ;;  %222 = vst.msk [vmem:[#allocation2 + $0x18] sm:$0xff] %vm218_vm1, %v874_v17 }
  0x11   : > { %v283_v3 = vld [vmem:[%s924_s22] sm:$0xff]  ;;  %811 = vmatmul.msk.f32.vlgmr.msra.gmra.mxu3 %vm316_vm0, %v307_v2  ;;  %v284_v7 = vld [vmem:[%s924_s22 + $0x8] sm:$0xff]  ;;  %v285_v11 = vld [vmem:[%s924_s22 + $0x10] sm:$0xff]  ;;  %223 = vst.msk [vmem:[#allocation2 + $0x20] sm:$0xff] %vm218_vm1, %v874_v17 }
  0x12   : > { %v291_v4 = vld [vmem:[%s924_s22 + $0x40] sm:$0xff]  ;;  %787 = vmatmul.msk.f32.vlgmr.msra.gmra.mxu0 %vm316_vm0, %v283_v3  ;;  %v292_v8 = vld [vmem:[%s924_s22 + $0x48] sm:$0xff]  ;;  %v293_v12 = vld [vmem:[%s924_s22 + $0x50] sm:$0xff]  ;;  %224 = vst.msk [vmem:[#allocation2 + $0x28] sm:$0xff] %vm218_vm1, %v874_v17 }
  0x13   : > { %795 = vmatmul.msk.f32.vlgmr.msra.gmra.mxu1 %vm316_vm0, %v291_v4  ;;  %v302_v13 = vld [vmem:[%s924_s22 + $0x98] sm:$0xff]  ;;  %v303_v18 = vld [vmem:[%s924_s22 + $0xa0] sm:$0xff]  ;;  %225 = vst.msk [vmem:[#allocation2 + $0x30] sm:$0xff] %vm218_vm1, %v874_v17  ;;  %v304_v22 = vld [vmem:[%s924_s22 + $0xa8] sm:$0xff] }
  0x14   : > { %v310_v14 = vld [vmem:[%s924_s22 + $0xd8] sm:$0xff]  ;;  %v311_v19 = vld [vmem:[%s924_s22 + $0xe0] sm:$0xff]  ;;  %226 = vst.msk [vmem:[#allocation2 + $0x38] sm:$0xff] %vm218_vm1, %v874_v17  ;;  %v312_v23 = vld [vmem:[%s924_s22 + $0xe8] sm:$0xff] }
  0x15   : > { %v286_v15 = vld [vmem:[%s924_s22 + $0x18] sm:$0xff]  ;;  %v287_v20 = vld [vmem:[%s924_s22 + $0x20] sm:$0xff]  ;;  %227 = vst.msk [vmem:[#allocation2 + $0x40] sm:$0xff] %vm218_vm1, %v874_v17  ;;  %v288_v24 = vld [vmem:[%s924_s22 + $0x28] sm:$0xff] }
  0x16   : > { %v294_v16 = vld [vmem:[%s924_s22 + $0x58] sm:$0xff]  ;;  %v295_v21 = vld [vmem:[%s924_s22 + $0x60] sm:$0xff]  ;;  %228 = vst.msk [vmem:[#allocation2 + $0x48] sm:$0xff] %vm218_vm1, %v874_v17  ;;  %v296_v25 = vld [vmem:[%s924_s22 + $0x68] sm:$0xff] }
  0x17   : > { %229 = vst.msk [vmem:[#allocation2 + $0x50] sm:$0xff] %vm218_vm1, %v874_v17  ;;  %v305_v26 = vld [vmem:[%s924_s22 + $0xb0] sm:$0xff]  ;;  %v306_v30 = vld [vmem:[%s924_s22 + $0xb8] sm:$0xff]  ;;  %v251_v34 = vld [vmem:[#allocation2] sm:$0xff] }
  0x18   : > { %804 = vmatmul.msk.f32.gmra.mxu2 %vm316_vm0, %v300_v5  ;;  %230 = vst.msk [vmem:[#allocation2 + $0x58] sm:$0xff] %vm218_vm1, %v874_v17  ;;  %v313_v27 = vld [vmem:[%s924_s22 + $0xf0] sm:$0xff]  ;;  %v314_v31 = vld [vmem:[%s924_s22 + $0xf8] sm:$0xff]  ;;  %v252_v46 = vld [vmem:[#allocation2 + $0x8] sm:$0xff] }
  0x19   : > { %812 = vmatmul.msk.f32.gmra.mxu3 %vm316_vm0, %v308_v6  ;;  %231 = vst.msk [vmem:[#allocation2 + $0x60] sm:$0xff] %vm218_vm1, %v874_v17  ;;  %v289_v28 = vld [vmem:[%s924_s22 + $0x30] sm:$0xff]  ;;  %v290_v32 = vld [vmem:[%s924_s22 + $0x38] sm:$0xff] }
  0x1a   : > { %788 = vmatmul.msk.f32.gmra.mxu0 %vm316_vm0, %v284_v7  ;;  %232 = vst.msk [vmem:[#allocation2 + $0x68] sm:$0xff] %vm218_vm1, %v874_v17  ;;  %v297_v29 = vld [vmem:[%s924_s22 + $0x70] sm:$0xff]  ;;  %v298_v33 = vld [vmem:[%s924_s22 + $0x78] sm:$0xff] }
  0x1b   : > { %796 = vmatmul.msk.f32.gmra.mxu1 %vm316_vm0, %v292_v8  ;;  %233 = vst.msk [vmem:[#allocation2 + $0x70] sm:$0xff] %vm218_vm1, %v874_v17  ;;  %v253_v63 = vld [vmem:[#allocation2 + $0x10] sm:$0xff] }
  0x1c   : > { %234 = vst.msk [vmem:[#allocation2 + $0x78] sm:$0xff] %vm218_vm1, %v874_v17  ;;  %v259_v35 = vld [vmem:[#allocation2 + $0x40] sm:$0xff] }
  0x1d   : > { %235 = vst.msk [vmem:[#allocation2 + $0x80] sm:$0xff] %vm218_vm1, %v874_v17  ;;  %v260_v47 = vld [vmem:[#allocation2 + $0x48] sm:$0xff] }
  0x1e   : > { %236 = vst.msk [vmem:[#allocation2 + $0x88] sm:$0xff] %vm218_vm1, %v874_v17  ;;  %v261_v4 = vld [vmem:[#allocation2 + $0x50] sm:$0xff] }
  0x1f   : > { %237 = vst.msk [vmem:[#allocation2 + $0x90] sm:$0xff] %vm218_vm1, %v874_v17 }
  0x20   : > { %805 = vmatmul.msk.f32.gmra.mxu2 %vm316_vm0, %v301_v9  ;;  %238 = vst.msk [vmem:[#allocation2 + $0x98] sm:$0xff] %vm218_vm1, %v874_v17 }
  0x21   : > { %813 = vmatmul.msk.f32.gmra.mxu3 %vm316_vm0, %v309_v10  ;;  %239 = vst.msk [vmem:[#allocation2 + $0xa0] sm:$0xff] %vm218_vm1, %v874_v17 }
  0x22   : > { %789 = vmatmul.msk.f32.gmra.mxu0 %vm316_vm0, %v285_v11  ;;  %240 = vst.msk [vmem:[#allocation2 + $0xa8] sm:$0xff] %vm218_vm1, %v874_v17 }
  0x23   : > { %797 = vmatmul.msk.f32.gmra.mxu1 %vm316_vm0, %v293_v12  ;;  %241 = vst.msk [vmem:[#allocation2 + $0xb0] sm:$0xff] %vm218_vm1, %v874_v17 }
  0x24   : > { %242 = vst.msk [vmem:[#allocation2 + $0xb8] sm:$0xff] %vm218_vm1, %v874_v17  ;;  %v267_v40 = vld [vmem:[#allocation2 + $0x80] sm:$0xff] }
  0x25   : > { %243 = vst.msk [vmem:[#allocation2 + $0xc0] sm:$0xff] %vm218_vm1, %v874_v17  ;;  %v268_v56 = vld [vmem:[#allocation2 + $0x88] sm:$0xff] }
  0x26   : > { %244 = vst.msk [vmem:[#allocation2 + $0xc8] sm:$0xff] %vm218_vm1, %v874_v17  ;;  %v269_v12 = vld [vmem:[#allocation2 + $0x90] sm:$0xff] }
  0x27   : > { %245 = vst.msk [vmem:[#allocation2 + $0xd0] sm:$0xff] %vm218_vm1, %v874_v17 }
  0x28   : > { %806 = vmatmul.msk.f32.gmra.mxu2 %vm316_vm0, %v302_v13  ;;  %246 = vst.msk [vmem:[#allocation2 + $0xd8] sm:$0xff] %vm218_vm1, %v874_v17 }
  0x29   : > { %814 = vmatmul.msk.f32.gmra.mxu3 %vm316_vm0, %v310_v14  ;;  %247 = vst.msk [vmem:[#allocation2 + $0xe0] sm:$0xff] %vm218_vm1, %v874_v17 }
  0x2a   : > { %790 = vmatmul.msk.f32.gmra.mxu0 %vm316_vm0, %v286_v15  ;;  %248 = vst.msk [vmem:[#allocation2 + $0xe8] sm:$0xff] %vm218_vm1, %v874_v17 }
  0x2b   : > { %798 = vmatmul.msk.f32.gmra.mxu1 %vm316_vm0, %v294_v16  ;;  %249 = vst.msk [vmem:[#allocation2 + $0xf0] sm:$0xff] %vm218_vm1, %v874_v17 }
  0x2c   : > { %250 = vst.msk [vmem:[#allocation2 + $0xf8] sm:$0xff] %vm218_vm1, %v874_v17  ;;  %v275_v41 = vld [vmem:[#allocation2 + $0xc0] sm:$0xff] }
  0x2d   : > { %v276_v57 = vld [vmem:[#allocation2 + $0xc8] sm:$0xff] }
  0x2e   : > { %v277_v13 = vld [vmem:[#allocation2 + $0xd0] sm:$0xff] }
  0x30   : > { %807 = vmatmul.msk.f32.gmra.mxu2 %vm316_vm0, %v303_v18 }
  0x31   : > { %815 = vmatmul.msk.f32.gmra.mxu3 %vm316_vm0, %v311_v19  ;;  %v254_v19 = vld [vmem:[#allocation2 + $0x18] sm:$0xff] }
  0x32   : > { %791 = vmatmul.msk.f32.gmra.mxu0 %vm316_vm0, %v287_v20  ;;  %v262_v20 = vld [vmem:[#allocation2 + $0x58] sm:$0xff] }
  0x33   : > { %799 = vmatmul.msk.f32.gmra.mxu1 %vm316_vm0, %v295_v21 }
  0x38   : > { %808 = vmatmul.msk.f32.gmra.mxu2 %vm316_vm0, %v304_v22 }
  0x39   : > { %816 = vmatmul.msk.f32.gmra.mxu3 %vm316_vm0, %v312_v23 }
  0x3a   : > { %792 = vmatmul.msk.f32.gmra.mxu0 %vm316_vm0, %v288_v24 }
  0x3b   : > { %800 = vmatmul.msk.f32.gmra.mxu1 %vm316_vm0, %v296_v25 }
  0x40   : > { %809 = vmatmul.msk.f32.gmra.mxu2 %vm316_vm0, %v305_v26 }
  0x41   : > { %817 = vmatmul.msk.f32.gmra.mxu3 %vm316_vm0, %v313_v27 }
  0x42   : > { %793 = vmatmul.msk.f32.gmra.mxu0 %vm316_vm0, %v289_v28 }
  0x43   : > { %801 = vmatmul.msk.f32.gmra.mxu1 %vm316_vm0, %v297_v29 }
  0x48   : > { %810 = vmatmul.msk.f32.gmra.mxu2 %vm316_vm0, %v306_v30  ;;  %v270_v30 = vld [vmem:[#allocation2 + $0x98] sm:$0xff] }
  0x49   : > { %818 = vmatmul.msk.f32.gmra.mxu3 %vm316_vm0, %v314_v31 }
  0x4a   : > { %794 = vmatmul.msk.f32.gmra.mxu0 %vm316_vm0, %v290_v32 }
  0x4b   : > { %802 = vmatmul.msk.f32.gmra.mxu1 %vm316_vm0, %v298_v33  ;;  %v278_v33 = vld [vmem:[#allocation2 + $0xd8] sm:$0xff] }
  0x8f   : > { %v430_v36 = vpop.f32.mrf.mxu0 }
  0x90   : > { %v454_v37 = vpop.f32.mrf.mxu1  ;;  %v526_v38 = vadd.f32 %v430_v36, %v251_v34 }
  0x91   : > { %v534_v39 = vadd.f32 %v454_v37, %v259_v35  ;;  %v255_v37 = vld [vmem:[#allocation2 + $0x20] sm:$0xff] }
  0x92   : > { %559 = vst.msk [vmem:[#allocation2] sm:$0xff] %vm218_vm1, %v526_v38 }
  0x93   : > { %567 = vst.msk [vmem:[#allocation2 + $0x40] sm:$0xff] %vm218_vm1, %v534_v39  ;;  %v478_v42 = vpop.f32.mrf.mxu2 }
  0x94   : > { %v502_v43 = vpop.f32.mrf.mxu3  ;;  %v542_v44 = vadd.f32 %v478_v42, %v267_v40 }
  0x95   : > { %v550_v45 = vadd.f32 %v502_v43, %v275_v41 }
  0x96   : > { %575 = vst.msk [vmem:[#allocation2 + $0x80] sm:$0xff] %vm218_vm1, %v542_v44 }
  0x97   : > { %v433_v49 = vpop.f32.mrf.mxu0  ;;  %583 = vst.msk [vmem:[#allocation2 + $0xc0] sm:$0xff] %vm218_vm1, %v550_v45 }
  0x98   : > { %v457_v50 = vpop.f32.mrf.mxu1  ;;  %v527_v51 = vadd.f32 %v433_v49, %v252_v46 }
  0x99   : > { %v535_v52 = vadd.f32 %v457_v50, %v260_v47  ;;  %v594_v53 = vld [vmem:[#allocation2] sm:$0xff] }
  0x9a   : > { %v630_v54 = vadd.f32 %v1059_v48, %v594_v53  ;;  %v602_v55 = vld [vmem:[#allocation2 + $0x40] sm:$0xff]  ;;  %560 = vst.msk [vmem:[#allocation2 + $0x8] sm:$0xff] %vm218_vm1, %v527_v51 }
  0x9b   : > { %v638_v58 = vadd.f32 %v1059_v48, %v602_v55  ;;  %568 = vst.msk [vmem:[#allocation2 + $0x48] sm:$0xff] %vm218_vm1, %v535_v52  ;;  %v481_v59 = vpop.f32.mrf.mxu2  ;;  %v263_v47 = vld [vmem:[#allocation2 + $0x60] sm:$0xff] }
  0x9c   : > { %662 = vst.msk [vmem:[%s1068_s27] sm:$0xff] %vm218_vm1, %v630_v54  ;;  %v505_v60 = vpop.f32.mrf.mxu3  ;;  %v543_v61 = vadd.f32 %v481_v59, %v268_v56  ;;  %v271_v50 = vld [vmem:[#allocation2 + $0xa0] sm:$0xff]  ;;  %v256_v59 = vld [vmem:[#allocation2 + $0x28] sm:$0xff] }
  0x9d   : > { %670 = vst.msk [vmem:[%s1068_s27 + $0x40] sm:$0xff] %vm218_vm1, %v638_v58  ;;  %v551_v62 = vadd.f32 %v505_v60, %v276_v57  ;;  %v610_v0 = vld [vmem:[#allocation2 + $0x80] sm:$0xff]  ;;  %v264_v60 = vld [vmem:[#allocation2 + $0x68] sm:$0xff] }
  0x9e   : > { %v646_v1 = vadd.f32 %v1059_v48, %v610_v0  ;;  %v618_v2 = vld [vmem:[#allocation2 + $0xc0] sm:$0xff]  ;;  %576 = vst.msk [vmem:[#allocation2 + $0x88] sm:$0xff] %vm218_vm1, %v543_v61 }
  0x9f   : > { %v436_v3 = vpop.f32.mrf.mxu0  ;;  %v654_v6 = vadd.f32 %v1059_v48, %v618_v2  ;;  %584 = vst.msk [vmem:[#allocation2 + $0xc8] sm:$0xff] %vm218_vm1, %v551_v62  ;;  %v279_v54 = vld [vmem:[#allocation2 + $0xe0] sm:$0xff] }
  0xa0   : > { %v460_v5 = vpop.f32.mrf.mxu1  ;;  %v528_v7 = vadd.f32 %v436_v3, %v253_v63  ;;  %678 = vst.msk [vmem:[%s1068_s27 + $0x80] sm:$0xff] %vm218_vm1, %v646_v1 }
  0xa1   : > { %v595_v8 = vld [vmem:[#allocation2 + $0x8] sm:$0xff]  ;;  %686 = vst.msk [vmem:[%s1068_s27 + $0xc0] sm:$0xff] %vm218_vm1, %v654_v6  ;;  %v536_v11 = vadd.f32 %v460_v5, %v261_v4 }
  0xa2   : > { %v631_v9 = vadd.f32 %v1059_v48, %v595_v8  ;;  %v603_v10 = vld [vmem:[#allocation2 + $0x48] sm:$0xff]  ;;  %561 = vst.msk [vmem:[#allocation2 + $0x10] sm:$0xff] %vm218_vm1, %v528_v7 }
  0xa3   : > { %v639_v14 = vadd.f32 %v1059_v48, %v603_v10  ;;  %v484_v15 = vpop.f32.mrf.mxu2  ;;  %569 = vst.msk [vmem:[#allocation2 + $0x50] sm:$0xff] %vm218_vm1, %v536_v11  ;;  %v272_v5 = vld [vmem:[#allocation2 + $0xa8] sm:$0xff] }
  0xa4   : > { %663 = vst.msk [vmem:[%s1068_s27 + $0x8] sm:$0xff] %vm218_vm1, %v631_v9  ;;  %v508_v16 = vpop.f32.mrf.mxu3  ;;  %v544_v17 = vadd.f32 %v484_v15, %v269_v12  ;;  %v280_v6 = vld [vmem:[#allocation2 + $0xe8] sm:$0xff] }
  0xa5   : > { %671 = vst.msk [vmem:[%s1068_s27 + $0x48] sm:$0xff] %vm218_vm1, %v639_v14  ;;  %v552_v18 = vadd.f32 %v508_v16, %v277_v13  ;;  %v611_v21 = vld [vmem:[#allocation2 + $0x88] sm:$0xff]  ;;  %v257_v14 = vld [vmem:[#allocation2 + $0x30] sm:$0xff] }
  0xa6   : > { %v647_v22 = vadd.f32 %v1059_v48, %v611_v21  ;;  %v619_v23 = vld [vmem:[#allocation2 + $0xc8] sm:$0xff]  ;;  %577 = vst.msk [vmem:[#allocation2 + $0x90] sm:$0xff] %vm218_vm1, %v544_v17 }
  0xa7   : > { %v439_v24 = vpop.f32.mrf.mxu0  ;;  %v655_v26 = vadd.f32 %v1059_v48, %v619_v23  ;;  %585 = vst.msk [vmem:[#allocation2 + $0xd0] sm:$0xff] %vm218_vm1, %v552_v18 }
  0xa8   : > { %v463_v25 = vpop.f32.mrf.mxu1  ;;  %v529_v27 = vadd.f32 %v439_v24, %v254_v19  ;;  %679 = vst.msk [vmem:[%s1068_s27 + $0x88] sm:$0xff] %vm218_vm1, %v647_v22  ;;  %v265_v22 = vld [vmem:[#allocation2 + $0x70] sm:$0xff] }
  0xa9   : > { %v537_v28 = vadd.f32 %v463_v25, %v262_v20  ;;  %687 = vst.msk [vmem:[%s1068_s27 + $0xc8] sm:$0xff] %vm218_vm1, %v655_v26  ;;  %v596_v29 = vld [vmem:[#allocation2 + $0x10] sm:$0xff] }
  0xaa   : > { %v632_v31 = vadd.f32 %v1059_v48, %v596_v29  ;;  %562 = vst.msk [vmem:[#allocation2 + $0x18] sm:$0xff] %vm218_vm1, %v529_v27  ;;  %v604_v35 = vld [vmem:[#allocation2 + $0x50] sm:$0xff] }
  0xab   : > { %570 = vst.msk [vmem:[#allocation2 + $0x58] sm:$0xff] %vm218_vm1, %v537_v28  ;;  %v487_v32 = vpop.f32.mrf.mxu2  ;;  %v640_v38 = vadd.f32 %v1059_v48, %v604_v35  ;;  %v273_v26 = vld [vmem:[#allocation2 + $0xb0] sm:$0xff]  ;;  %v258_v35 = vld [vmem:[#allocation2 + $0x38] sm:$0xff] }
  0xac   : > { %v511_v34 = vpop.f32.mrf.mxu3  ;;  %664 = vst.msk [vmem:[%s1068_s27 + $0x10] sm:$0xff] %vm218_vm1, %v632_v31  ;;  %v545_v36 = vadd.f32 %v487_v32, %v270_v30  ;;  %v281_v32 = vld [vmem:[#allocation2 + $0xf0] sm:$0xff] }
  0xad   : > { %v612_v39 = vld [vmem:[#allocation2 + $0x90] sm:$0xff]  ;;  %v553_v42 = vadd.f32 %v511_v34, %v278_v33  ;;  %672 = vst.msk [vmem:[%s1068_s27 + $0x50] sm:$0xff] %vm218_vm1, %v640_v38 }
  0xae   : > { %v648_v40 = vadd.f32 %v1059_v48, %v612_v39  ;;  %v620_v41 = vld [vmem:[#allocation2 + $0xd0] sm:$0xff]  ;;  %578 = vst.msk [vmem:[#allocation2 + $0x98] sm:$0xff] %vm218_vm1, %v545_v36 }
  0xaf   : > { %v442_v43 = vpop.f32.mrf.mxu0  ;;  %v656_v45 = vadd.f32 %v1059_v48, %v620_v41  ;;  %586 = vst.msk [vmem:[#allocation2 + $0xd8] sm:$0xff] %vm218_vm1, %v553_v42  ;;  %v266_v41 = vld [vmem:[#allocation2 + $0x78] sm:$0xff] }
  0xb0   : > { %v466_v44 = vpop.f32.mrf.mxu1  ;;  %v530_v46 = vadd.f32 %v442_v43, %v255_v37  ;;  %680 = vst.msk [vmem:[%s1068_s27 + $0x90] sm:$0xff] %vm218_vm1, %v648_v40 }
  0xb1   : > { %688 = vst.msk [vmem:[%s1068_s27 + $0xd0] sm:$0xff] %vm218_vm1, %v656_v45  ;;  %v597_v49 = vld [vmem:[#allocation2 + $0x18] sm:$0xff]  ;;  %v538_v53 = vadd.f32 %v466_v44, %v263_v47 }
  0xb2   : > { %v633_v51 = vadd.f32 %v1059_v48, %v597_v49  ;;  %v605_v52 = vld [vmem:[#allocation2 + $0x58] sm:$0xff]  ;;  %563 = vst.msk [vmem:[#allocation2 + $0x20] sm:$0xff] %vm218_vm1, %v530_v46 }
  0xb3   : > { %v641_v55 = vadd.f32 %v1059_v48, %v605_v52  ;;  %v490_v56 = vpop.f32.mrf.mxu2  ;;  %571 = vst.msk [vmem:[#allocation2 + $0x60] sm:$0xff] %vm218_vm1, %v538_v53  ;;  %v274_v47 = vld [vmem:[#allocation2 + $0xb8] sm:$0xff] }
  0xb4   : > { %v514_v57 = vpop.f32.mrf.mxu3  ;;  %665 = vst.msk [vmem:[%s1068_s27 + $0x18] sm:$0xff] %vm218_vm1, %v633_v51  ;;  %v546_v58 = vadd.f32 %v490_v56, %v271_v50  ;;  %v282_v49 = vld [vmem:[#allocation2 + $0xf8] sm:$0xff] }
  0xb5   : > { %673 = vst.msk [vmem:[%s1068_s27 + $0x58] sm:$0xff] %vm218_vm1, %v641_v55  ;;  %v613_v61 = vld [vmem:[#allocation2 + $0x98] sm:$0xff]  ;;  %v554_v62 = vadd.f32 %v514_v57, %v279_v54 }
  0xb6   : > { %v649_v63 = vadd.f32 %v1059_v48, %v613_v61  ;;  %579 = vst.msk [vmem:[#allocation2 + $0xa0] sm:$0xff] %vm218_vm1, %v546_v58  ;;  %v621_v4 = vld [vmem:[#allocation2 + $0xd8] sm:$0xff] }
  0xb7   : > { %v445_v0 = vpop.f32.mrf.mxu0  ;;  %587 = vst.msk [vmem:[#allocation2 + $0xe0] sm:$0xff] %vm218_vm1, %v554_v62  ;;  %v657_v7 = vadd.f32 %v1059_v48, %v621_v4 }
  0xb8   : > { %v469_v1 = vpop.f32.mrf.mxu1  ;;  %v531_v2 = vadd.f32 %v445_v0, %v256_v59  ;;  %681 = vst.msk [vmem:[%s1068_s27 + $0x98] sm:$0xff] %vm218_vm1, %v649_v63 }
  0xb9   : > { %v539_v3 = vadd.f32 %v469_v1, %v264_v60  ;;  %v598_v8 = vld [vmem:[#allocation2 + $0x20] sm:$0xff]  ;;  %689 = vst.msk [vmem:[%s1068_s27 + $0xd8] sm:$0xff] %vm218_vm1, %v657_v7 }
  0xba   : > { %564 = vst.msk [vmem:[#allocation2 + $0x28] sm:$0xff] %vm218_vm1, %v531_v2  ;;  %v634_v9 = vadd.f32 %v1059_v48, %v598_v8  ;;  %v606_v15 = vld [vmem:[#allocation2 + $0x60] sm:$0xff] }
  0xbb   : > { %572 = vst.msk [vmem:[#allocation2 + $0x68] sm:$0xff] %vm218_vm1, %v539_v3  ;;  %v493_v10 = vpop.f32.mrf.mxu2  ;;  %v642_v16 = vadd.f32 %v1059_v48, %v606_v15 }
  0xbc   : > { %v517_v11 = vpop.f32.mrf.mxu3  ;;  %v547_v12 = vadd.f32 %v493_v10, %v272_v5  ;;  %666 = vst.msk [vmem:[%s1068_s27 + $0x20] sm:$0xff] %vm218_vm1, %v634_v9 }
  0xbd   : > { %v555_v13 = vadd.f32 %v517_v11, %v280_v6  ;;  %v614_v17 = vld [vmem:[#allocation2 + $0xa0] sm:$0xff]  ;;  %674 = vst.msk [vmem:[%s1068_s27 + $0x60] sm:$0xff] %vm218_vm1, %v642_v16 }
  0xbe   : > { %580 = vst.msk [vmem:[#allocation2 + $0xa8] sm:$0xff] %vm218_vm1, %v547_v12  ;;  %v650_v20 = vadd.f32 %v1059_v48, %v614_v17  ;;  %v622_v23 = vld [vmem:[#allocation2 + $0xe0] sm:$0xff] }
  0xbf   : > { %v448_v18 = vpop.f32.mrf.mxu0  ;;  %588 = vst.msk [vmem:[#allocation2 + $0xe8] sm:$0xff] %vm218_vm1, %v555_v13  ;;  %v658_v24 = vadd.f32 %v1059_v48, %v622_v23 }
  0xc0   : > { %v472_v19 = vpop.f32.mrf.mxu1  ;;  %v532_v21 = vadd.f32 %v448_v18, %v257_v14  ;;  %682 = vst.msk [vmem:[%s1068_s27 + $0xa0] sm:$0xff] %vm218_vm1, %v650_v20 }
  0xc1   : > { %v599_v25 = vld [vmem:[#allocation2 + $0x28] sm:$0xff]  ;;  %v540_v29 = vadd.f32 %v472_v19, %v265_v22  ;;  %690 = vst.msk [vmem:[%s1068_s27 + $0xe0] sm:$0xff] %vm218_vm1, %v658_v24 }
  0xc2   : > { %v635_v27 = vadd.f32 %v1059_v48, %v599_v25  ;;  %v607_v28 = vld [vmem:[#allocation2 + $0x68] sm:$0xff]  ;;  %565 = vst.msk [vmem:[#allocation2 + $0x30] sm:$0xff] %vm218_vm1, %v532_v21 }
  0xc3   : > { %v643_v30 = vadd.f32 %v1059_v48, %v607_v28  ;;  %v496_v31 = vpop.f32.mrf.mxu2  ;;  %573 = vst.msk [vmem:[#allocation2 + $0x70] sm:$0xff] %vm218_vm1, %v540_v29 }
  0xc4   : > { %v520_v33 = vpop.f32.mrf.mxu3  ;;  %667 = vst.msk [vmem:[%s1068_s27 + $0x28] sm:$0xff] %vm218_vm1, %v635_v27  ;;  %v548_v34 = vadd.f32 %v496_v31, %v273_v26 }
  0xc5   : > { %675 = vst.msk [vmem:[%s1068_s27 + $0x68] sm:$0xff] %vm218_vm1, %v643_v30  ;;  %v615_v36 = vld [vmem:[#allocation2 + $0xa8] sm:$0xff]  ;;  %v556_v39 = vadd.f32 %v520_v33, %v281_v32 }
  0xc6   : > { %v651_v37 = vadd.f32 %v1059_v48, %v615_v36  ;;  %v623_v38 = vld [vmem:[#allocation2 + $0xe8] sm:$0xff]  ;;  %581 = vst.msk [vmem:[#allocation2 + $0xb0] sm:$0xff] %vm218_vm1, %v548_v34 }
  0xc7   : > { %v451_v40 = vpop.f32.mrf.mxu0  ;;  %v659_v43 = vadd.f32 %v1059_v48, %v623_v38  ;;  %589 = vst.msk [vmem:[#allocation2 + $0xf0] sm:$0xff] %vm218_vm1, %v556_v39 }
  0xc8   : > { %v475_v42 = vpop.f32.mrf.mxu1  ;;  %v533_v44 = vadd.f32 %v451_v40, %v258_v35  ;;  %683 = vst.msk [vmem:[%s1068_s27 + $0xa8] sm:$0xff] %vm218_vm1, %v651_v37 }
  0xc9   : > { %691 = vst.msk [vmem:[%s1068_s27 + $0xe8] sm:$0xff] %vm218_vm1, %v659_v43  ;;  %v600_v45 = vld [vmem:[#allocation2 + $0x30] sm:$0xff]  ;;  %v541_v46 = vadd.f32 %v475_v42, %v266_v41 }
  0xca   : > { %v636_v50 = vadd.f32 %v1059_v48, %v600_v45  ;;  %566 = vst.msk [vmem:[#allocation2 + $0x38] sm:$0xff] %vm218_vm1, %v533_v44  ;;  %v608_v55 = vld [vmem:[#allocation2 + $0x70] sm:$0xff] }
  0xcb   : > { %v499_v51 = vpop.f32.mrf.mxu2  ;;  %574 = vst.msk [vmem:[#allocation2 + $0x78] sm:$0xff] %vm218_vm1, %v541_v46  ;;  %v644_v56 = vadd.f32 %v1059_v48, %v608_v55 }
  0xcc   : > { %v523_v52 = vpop.f32.mrf.mxu3  ;;  %668 = vst.msk [vmem:[%s1068_s27 + $0x30] sm:$0xff] %vm218_vm1, %v636_v50  ;;  %v549_v53 = vadd.f32 %v499_v51, %v274_v47 }
  0xcd   : > { %v557_v54 = vadd.f32 %v523_v52, %v282_v49  ;;  %v616_v57 = vld [vmem:[#allocation2 + $0xb0] sm:$0xff]  ;;  %676 = vst.msk [vmem:[%s1068_s27 + $0x70] sm:$0xff] %vm218_vm1, %v644_v56 }
  0xce   : > { %582 = vst.msk [vmem:[#allocation2 + $0xb8] sm:$0xff] %vm218_vm1, %v549_v53  ;;  %v652_v58 = vadd.f32 %v1059_v48, %v616_v57  ;;  %v624_v59 = vld [vmem:[#allocation2 + $0xf0] sm:$0xff] }
  0xcf   : > { %590 = vst.msk [vmem:[#allocation2 + $0xf8] sm:$0xff] %vm218_vm1, %v557_v54  ;;  %v660_v60 = vadd.f32 %v1059_v48, %v624_v59 }
  0xd0   : > { %684 = vst.msk [vmem:[%s1068_s27 + $0xb0] sm:$0xff] %vm218_vm1, %v652_v58 }
  0xd1   : > { %v601_v61 = vld [vmem:[#allocation2 + $0x38] sm:$0xff]  ;;  %692 = vst.msk [vmem:[%s1068_s27 + $0xf0] sm:$0xff] %vm218_vm1, %v660_v60 }
  0xd2   : > { %v637_v62 = vadd.f32 %v1059_v48, %v601_v61  ;;  %v609_v63 = vld [vmem:[#allocation2 + $0x78] sm:$0xff] }
  0xd3   : > { %v645_v0 = vadd.f32 %v1059_v48, %v609_v63 }
  0xd4   : > { %669 = vst.msk [vmem:[%s1068_s27 + $0x38] sm:$0xff] %vm218_vm1, %v637_v62 }
  0xd5   : > { %v617_v1 = vld [vmem:[#allocation2 + $0xb8] sm:$0xff]  ;;  %677 = vst.msk [vmem:[%s1068_s27 + $0x78] sm:$0xff] %vm218_vm1, %v645_v0 }
  0xd6   : > { %v653_v2 = vadd.f32 %v1059_v48, %v617_v1  ;;  %v625_v3 = vld [vmem:[#allocation2 + $0xf8] sm:$0xff] }
  0xd7   : > { %v661_v4 = vadd.f32 %v1059_v48, %v625_v3 }
  0xd8   : > { %685 = vst.msk [vmem:[%s1068_s27 + $0xb8] sm:$0xff] %vm218_vm1, %v653_v2 }
  0xd9   : > { %693 = vst.msk [vmem:[%s1068_s27 + $0xf8] sm:$0xff] %vm218_vm1, %v661_v4 }
  0xda PF: > { %s13_s14 = sadd.s32 1, %s872_s14   ;;  %s1207_s12 = smov %s868_s13 }
  0xdb   : > { %p10_p5 = scmp.ge.s32.totalorder %s13_s14, 4   ;;  %s1208_s13 = smov %s1210_s15 }
  0xdd   :  { %12 = sbr.rel (!%p10_p5) target bundleno = 2 (0x2), region = 73 }

</bundles_post_ra>
